<compile_context>
chip_gen: v7x
topology: tpu7x:2x2x1
jax: 0.10.0
libtpu: 0.0.40
codegen_flags: <defaults>
</compile_context>

<pallas_src>
import functools

import numpy as np
import jax
import jax.numpy as jnp
from jax.experimental import pallas as pl
from jax.experimental.pallas import tpu as pltpu

OUT_LANES = 128          # lane-dense padded output width; real out_dim sliced outside
FUSED_MAX_N = 2048       # bf16 A_hat <= 8 MiB -> keep A resident in VMEM, single call
STREAM_TM = 512          # streamed-path row tile
STREAM_TK = 2048         # streamed-path K tile (A tile = 512x2048 bf16 = 2 MiB)
STREAM_VMEM_LIMIT = 32 * 1024 * 1024   # 2x2 MiB A bufs + side bufs, safe on all gens
FUSED_VMEM_LIMIT = 40 * 1024 * 1024    # whole-A-resident path (<= v7x 64 MiB physical)


def _round_up(x, m):
    return ((x + m - 1) // m) * m


# --------------------------- kernels ---------------------------------------


def fused_gcn_kernel(a_ref, xw_ref, b1_ref, w2_ref, b2_ref, o_ref):
    """Both GCN layers with A_hat resident in VMEM (read from HBM exactly once)."""
    a = a_ref[...]                                                  # (n, n) bf16
    h = jnp.dot(a, xw_ref[...], preferred_element_type=jnp.float32)
    h = jnp.maximum(h + b1_ref[...], 0.0)                           # (n, hidden) f32
    z = jnp.dot(h.astype(jnp.bfloat16), w2_ref[...],
                preferred_element_type=jnp.float32)                 # (n, 128) f32
    o_ref[...] = jnp.dot(a, z.astype(jnp.bfloat16),
                         preferred_element_type=jnp.float32) + b2_ref[...]


def agg_kernel(a_ref, m_ref, b_ref, o_ref, acc_ref, *, apply_relu):
    """OUT[i] = (sum_k A[i,k] @ M[k]) + b, optional relu; bf16 tiles, f32 accum."""
    k = pl.program_id(1)

    @pl.when(k == 0)
    def _():
        acc_ref[...] = jnp.zeros_like(acc_ref)

    acc_ref[...] += jnp.dot(a_ref[...], m_ref[...],
                            preferred_element_type=jnp.float32)

    @pl.when(k == pl.num_programs(1) - 1)
    def _():
        r = acc_ref[...] + b_ref[...]
        if apply_relu:
            r = jnp.maximum(r, 0.0)
        o_ref[...] = r.astype(o_ref.dtype)


# --------------------------- glue (plain JAX) -------------------------------


def build_normalized_adjacency(edge_index, num_nodes):
    """Dense A_hat = D^-1/2 (A + I) D^-1/2 from a (2, E) edge_index (f32)."""
    src = edge_index[0]
    dst = edge_index[1]
    # .add (not .set) so duplicate edges count in the degree, matching PyG gcn_norm.
    a = jnp.zeros((num_nodes, num_nodes), jnp.float32).at[dst, src].add(1.0)
    a = a + jnp.eye(num_nodes, dtype=jnp.float32)          # self loops -> deg >= 1
    deg = jnp.sum(a, axis=1)
    d_inv_sqrt = jax.lax.rsqrt(deg)
    return a * d_inv_sqrt[:, None] * d_inv_sqrt[None, :]


def _streamed_aggregate(a_pad, m_pad, bias_2d, *, apply_relu, out_dtype):
    """Tiled OUT = relu?(A_pad @ M_pad + bias) for graphs too big for the fused path."""
    n_pad = a_pad.shape[0]
    width = m_pad.shape[1]
    tm, tk = STREAM_TM, STREAM_TK
    grid = (n_pad // tm, n_pad // tk)
    kernel = functools.partial(agg_kernel, apply_relu=apply_relu)
    itemsize_m = int(m_pad.dtype.itemsize)
    itemsize_o = int(jnp.dtype(out_dtype).itemsize)
    bytes_accessed = (
        2 * n_pad * n_pad                                   # A_hat bf16, read once
        + (n_pad // tm) * n_pad * width * itemsize_m        # M re-streamed per row tile
        + n_pad * width * itemsize_o)                       # output write
    return pl.pallas_call(
        kernel,
        out_shape=jax.ShapeDtypeStruct((n_pad, width), out_dtype),
        grid_spec=pltpu.PrefetchScalarGridSpec(
            num_scalar_prefetch=0,
            grid=grid,
            in_specs=[
                pl.BlockSpec((tm, tk), lambda i, k: (i, k)),      # A_hat tile (2 MiB)
                pl.BlockSpec((tk, width), lambda i, k: (k, 0)),   # M tile
                pl.BlockSpec((1, width), lambda i, k: (0, 0)),    # bias (full)
            ],
            out_specs=pl.BlockSpec((tm, width), lambda i, k: (i, 0)),
            scratch_shapes=[pltpu.VMEM((tm, width), jnp.float32)],
        ),
        compiler_params=pltpu.CompilerParams(
            dimension_semantics=("parallel", "arbitrary"),
            vmem_limit_bytes=STREAM_VMEM_LIMIT),
        cost_estimate=pl.CostEstimate(
            flops=2 * n_pad * n_pad * width,
            transcendentals=0,
            bytes_accessed=bytes_accessed),
    )(a_pad, m_pad, bias_2d)


def trajectory_gnn_forward(x, edge_index, params):
    """Equivalent of TrajectoryGNN.forward(data) with data.x = x, data.edge_index = edge_index."""
    n = x.shape[0]
    w1, b1, w2, b2 = params
    in_dim, hidden = w1.shape
    out_dim = w2.shape[1]
    del in_dim

    # TODO(synk): for the real chain-trajectory topology a tridiagonal
    # pltpu.roll stencil (y = c*x + a*roll(x,+1) + b*roll(x,-1)) removes the
    # dense O(n^2) A_hat entirely; kept dense to preserve general edge_index
    # semantics.
    # TODO(synk): further halve A_hat HBM bytes with int8 (v5e/v6e) / fp8 (v7x)
    # quantization (entries are bounded in [0, 1]); bf16 kept for
    # generation-agnostic correctness.
    a_hat = build_normalized_adjacency(edge_index, n)

    # Tiny wrapper-side input projection; keeps the Pallas kernels pure MXU
    # aggregations over A_hat.
    xw = x.astype(jnp.float32) @ w1.astype(jnp.float32)             # (n, hidden) f32
    b1_2d = b1.reshape(1, hidden).astype(jnp.float32)
    b2_pad = jnp.zeros((1, OUT_LANES), jnp.float32).at[0, :out_dim].set(
        b2.astype(jnp.float32))

    if n <= FUSED_MAX_N:
        # ---- fused path: whole A_hat resident in VMEM, one launch ----
        n_pad = _round_up(max(n, 8), 128)
        a_pad = jnp.zeros((n_pad, n_pad), jnp.bfloat16).at[:n, :n].set(
            a_hat.astype(jnp.bfloat16))
        xw_pad = jnp.zeros((n_pad, hidden), jnp.bfloat16).at[:n, :].set(
            xw.astype(jnp.bfloat16))
        w2_pad = jnp.zeros((hidden, OUT_LANES), jnp.bfloat16).at[:, :out_dim].set(
            w2.astype(jnp.bfloat16))

        # TODO(synk): a single grid point leaves one TensorCore idle on v7x;
        # batch multiple trajectory graphs on a leading "parallel" grid axis
        # for real throughput.
        out_pad = pl.pallas_call(
            fused_gcn_kernel,
            out_shape=jax.ShapeDtypeStruct((n_pad, OUT_LANES), jnp.float32),
            grid_spec=pltpu.PrefetchScalarGridSpec(
                num_scalar_prefetch=0,
                grid=(1,),
                in_specs=[
                    pl.BlockSpec((n_pad, n_pad), lambda i: (0, 0)),       # A_hat
                    pl.BlockSpec((n_pad, hidden), lambda i: (0, 0)),      # XW
                    pl.BlockSpec((1, hidden), lambda i: (0, 0)),          # b1
                    pl.BlockSpec((hidden, OUT_LANES), lambda i: (0, 0)),  # W2 (padded)
                    pl.BlockSpec((1, OUT_LANES), lambda i: (0, 0)),       # b2 (padded)
                ],
                out_specs=pl.BlockSpec((n_pad, OUT_LANES), lambda i: (0, 0)),
            ),
            compiler_params=pltpu.CompilerParams(
                dimension_semantics=("arbitrary",),
                vmem_limit_bytes=FUSED_VMEM_LIMIT),
            cost_estimate=pl.CostEstimate(
                flops=(2 * n_pad * n_pad * hidden
                       + 2 * n_pad * hidden * OUT_LANES
                       + 2 * n_pad * n_pad * OUT_LANES),
                transcendentals=0,
                bytes_accessed=(2 * n_pad * n_pad + 2 * n_pad * hidden
                                + 2 * hidden * OUT_LANES
                                + 4 * n_pad * OUT_LANES)),
        )(a_pad, xw_pad, b1_2d, w2_pad, b2_pad)
        return out_pad[:n, :out_dim]

    # ---- streamed path: large graphs, big double-buffered A tiles ----
    n_pad = _round_up(n, STREAM_TK)     # STREAM_TK is a multiple of STREAM_TM
    a_pad = jnp.zeros((n_pad, n_pad), jnp.bfloat16).at[:n, :n].set(
        a_hat.astype(jnp.bfloat16))
    xw_pad = jnp.zeros((n_pad, hidden), jnp.bfloat16).at[:n, :].set(
        xw.astype(jnp.bfloat16))

    # layer 1: H = relu(A_hat @ XW + b1), f32 out so the W2 projection stays f32
    h = _streamed_aggregate(a_pad, xw_pad, b1_2d,
                            apply_relu=True, out_dtype=jnp.float32)

    # layer-2 reorder: Z = H @ W2 (tiny f32 matmul, lane-padded), OUT = A_hat @ Z + b2
    w2_pad_f32 = jnp.zeros((hidden, OUT_LANES), jnp.float32).at[:, :out_dim].set(
        w2.astype(jnp.float32))
    z = (h @ w2_pad_f32).astype(jnp.bfloat16)                        # (n_pad, 128) bf16
    out_pad = _streamed_aggregate(a_pad, z, b2_pad,
                                  apply_relu=False, out_dtype=jnp.float32)
    return out_pad[:n, :out_dim]


def init_params(key, in_dim=2, hidden=64, out_dim=2):
    """Deterministic glorot-ish init matching GCNConv(2,64) and GCNConv(64,2) shapes."""
    k1, k2, k3, k4 = jax.random.split(key, 4)
    w1 = jax.random.normal(k1, (in_dim, hidden), jnp.float32) * (1.0 / np.sqrt(in_dim))
    b1 = jax.random.normal(k2, (hidden,), jnp.float32) * 0.01
    w2 = jax.random.normal(k3, (hidden, out_dim), jnp.float32) * (1.0 / np.sqrt(hidden))
    b2 = jax.random.normal(k4, (out_dim,), jnp.float32) * 0.01
    return (w1, b1, w2, b2)


if __name__ == "__main__":
    # TODO(synk): the NaN-masking / torch_geometric.Data construction in the
    # original script is host-side data prep outside the module; we build a
    # small clean trajectory graph directly.
    N = 16  # nodes in the trajectory

    key = jax.random.PRNGKey(0)
    kx, kp = jax.random.split(key)

    # node features: (x, y) coordinates per node -> shape (N, 2)
    x = jax.random.normal(kx, (N, 2), jnp.float32)

    # chain graph i <-> i+1 (both directions), edge_index shape (2, 2*(N-1))
    src = np.concatenate([np.arange(N - 1), np.arange(1, N)])
    dst = np.concatenate([np.arange(1, N), np.arange(N - 1)])
    edge_index = jnp.asarray(np.stack([src, dst]), dtype=jnp.int32)

    params = init_params(kp)

    out = jax.jit(trajectory_gnn_forward)(x, edge_index, params)
    out = jax.block_until_ready(out)

    assert out.shape == (N, 2) and out.dtype == jnp.float32
    assert bool(jnp.all(jnp.isfinite(out)))

    # pure-JAX f32 reference (loose tolerance: kernel uses bf16 A_hat / XW / Z)
    w1, b1, w2, b2 = params
    a_f32 = build_normalized_adjacency(edge_index, N)
    h_ref = jnp.maximum(a_f32 @ (x @ w1) + b1[None, :], 0.0)
    ref = a_f32 @ (h_ref @ w2) + b2[None, :]
    np.testing.assert_allclose(np.asarray(out), np.asarray(ref), rtol=1e-1, atol=1e-1)

    print("KERNEL_OK")
</pallas_src>

<mosaic_0001>
module attributes {stable_mosaic.version = 11 : i64} {
  func.func @fused_gcn_kernel(%arg0: i32, %arg1: memref<128x128xbf16, #tpu.memory_space<vmem>>, %arg2: memref<128x64xbf16, #tpu.memory_space<vmem>>, %arg3: memref<1x64xf32, #tpu.memory_space<vmem>>, %arg4: memref<64x128xbf16, #tpu.memory_space<vmem>>, %arg5: memref<1x128xf32, #tpu.memory_space<vmem>>, %arg6: memref<128x128xf32, #tpu.memory_space<vmem>>) attributes {dimension_semantics = [#tpu.dimension_semantics<arbitrary>], iteration_bounds = array<i64: 1>, scalar_prefetch = 0 : i64, scratch_operands = 0 : i64, tpu.core_type = #tpu.core_type<tc>, window_params = [{pipeline_mode = #tpu.pipeline_mode<synchronous>, transform_indices = @transform_0, window_bounds = array<i64: 128, 128>}, {pipeline_mode = #tpu.pipeline_mode<synchronous>, transform_indices = @transform_1, window_bounds = array<i64: 128, 64>}, {pipeline_mode = #tpu.pipeline_mode<synchronous>, transform_indices = @transform_2, window_bounds = array<i64: 1, 64>}, {pipeline_mode = #tpu.pipeline_mode<synchronous>, transform_indices = @transform_3, window_bounds = array<i64: 64, 128>}, {pipeline_mode = #tpu.pipeline_mode<synchronous>, transform_indices = @transform_4, window_bounds = array<i64: 1, 128>}, {pipeline_mode = #tpu.pipeline_mode<synchronous>, transform_indices = @transform_5, window_bounds = array<i64: 128, 128>}]} {
    %c0 = arith.constant 0 : index
    %c0_0 = arith.constant 0 : index
    %0 = vector.load %arg1[%c0, %c0_0] : memref<128x128xbf16, #tpu.memory_space<vmem>>, vector<128x128xbf16>
    %c0_1 = arith.constant 0 : index
    %c0_2 = arith.constant 0 : index
    %1 = vector.load %arg2[%c0_1, %c0_2] : memref<128x64xbf16, #tpu.memory_space<vmem>>, vector<128x64xbf16>
    %cst = arith.constant dense<0.000000e+00> : vector<128x64xf32>
    %2 = tpu.matmul %0, %1, %cst {dimension_numbers = #tpu.dot_dimension_numbers<[1], [0], [0], [1], [0, 0, 1, 1], [], []>} : vector<128x128xbf16>, vector<128x64xbf16>, vector<128x64xf32> -> vector<128x64xf32>
    %c0_3 = arith.constant 0 : index
    %c0_4 = arith.constant 0 : index
    %3 = vector.load %arg3[%c0_3, %c0_4] : memref<1x64xf32, #tpu.memory_space<vmem>>, vector<1x64xf32>
    %4 = vector.broadcast %3 : vector<1x64xf32> to vector<128x64xf32>
    %5 = arith.addf %2, %4 : vector<128x64xf32>
    %cst_5 = arith.constant 0.000000e+00 : f32
    %6 = vector.broadcast %cst_5 : f32 to vector<128x64xf32>
    %7 = arith.maximumf %5, %6 : vector<128x64xf32>
    %8 = arith.truncf %7 : vector<128x64xf32> to vector<128x64xbf16>
    %c0_6 = arith.constant 0 : index
    %c0_7 = arith.constant 0 : index
    %9 = vector.load %arg4[%c0_6, %c0_7] : memref<64x128xbf16, #tpu.memory_space<vmem>>, vector<64x128xbf16>
    %cst_8 = arith.constant dense<0.000000e+00> : vector<128x128xf32>
    %10 = tpu.matmul %8, %9, %cst_8 {dimension_numbers = #tpu.dot_dimension_numbers<[1], [0], [0], [1], [0, 0, 1, 1], [], []>} : vector<128x64xbf16>, vector<64x128xbf16>, vector<128x128xf32> -> vector<128x128xf32>
    %11 = arith.truncf %10 : vector<128x128xf32> to vector<128x128xbf16>
    %cst_9 = arith.constant dense<0.000000e+00> : vector<128x128xf32>
    %12 = tpu.matmul %0, %11, %cst_9 {dimension_numbers = #tpu.dot_dimension_numbers<[1], [0], [0], [1], [0, 0, 1, 1], [], []>} : vector<128x128xbf16>, vector<128x128xbf16>, vector<128x128xf32> -> vector<128x128xf32>
    %c0_10 = arith.constant 0 : index
    %c0_11 = arith.constant 0 : index
    %13 = vector.load %arg5[%c0_10, %c0_11] : memref<1x128xf32, #tpu.memory_space<vmem>>, vector<1x128xf32>
    %14 = vector.broadcast %13 : vector<1x128xf32> to vector<128x128xf32>
    %15 = arith.addf %12, %14 : vector<128x128xf32>
    %c0_12 = arith.constant 0 : index
    %c0_13 = arith.constant 0 : index
    %16 = vector.load %arg6[%c0_12, %c0_13] : memref<128x128xf32, #tpu.memory_space<vmem>>, vector<128x128xf32>
    tpu.vector_store %arg6[%c0_12, %c0_13], %15 {strides = array<i32>} : memref<128x128xf32, #tpu.memory_space<vmem>>, vector<128x128xf32>,
    return
  }
  func.func @transform_0(%arg0: i32) -> (i32, i32) {
    %c0_i32 = arith.constant 0 : i32
    %c0_i32_0 = arith.constant 0 : i32
    %c0_i32_1 = arith.constant 0 : i32
    return %c0_i32, %c0_i32_0 : i32, i32
  }
  func.func @transform_1(%arg0: i32) -> (i32, i32) {
    %c0_i32 = arith.constant 0 : i32
    %c0_i32_0 = arith.constant 0 : i32
    %c0_i32_1 = arith.constant 0 : i32
    return %c0_i32, %c0_i32_0 : i32, i32
  }
  func.func @transform_2(%arg0: i32) -> (i32, i32) {
    %c0_i32 = arith.constant 0 : i32
    %c0_i32_0 = arith.constant 0 : i32
    %c0_i32_1 = arith.constant 0 : i32
    return %c0_i32, %c0_i32_0 : i32, i32
  }
  func.func @transform_3(%arg0: i32) -> (i32, i32) {
    %c0_i32 = arith.constant 0 : i32
    %c0_i32_0 = arith.constant 0 : i32
    %c0_i32_1 = arith.constant 0 : i32
    return %c0_i32, %c0_i32_0 : i32, i32
  }
  func.func @transform_4(%arg0: i32) -> (i32, i32) {
    %c0_i32 = arith.constant 0 : i32
    %c0_i32_0 = arith.constant 0 : i32
    %c0_i32_1 = arith.constant 0 : i32
    return %c0_i32, %c0_i32_0 : i32, i32
  }
  func.func @transform_5(%arg0: i32) -> (i32, i32) {
    %c0_i32 = arith.constant 0 : i32
    %c0_i32_0 = arith.constant 0 : i32
    %c0_i32_1 = arith.constant 0 : i32
    return %c0_i32, %c0_i32_0 : i32, i32
  }
}

</mosaic_0001>

<bundles_post_ra>
// kernel: trajectory_gnn_forward.1
= control target key start
LH: loop header
LB: loop body
LE: loop exit
PB: predicated region body
PF: predicated region fallthrough
CT: control target
= control target key end

     0   :  { %vm309_vm0 = vcmask 523264   ;;  %s941_s1 = inlined_call_operand.vmem [shape: bf16[128,64], index: 1, kind: input, shape index: {}]   ;;  %s942_s0 = inlined_call_operand.vmem [shape: bf16[128,128], index: 0, kind: input, shape index: {}]   ;;  %s943_s3 = inlined_call_operand.vmem [shape: bf16[64,128], index: 3, kind: input, shape index: {}]   ;;  %s944_s2 = inlined_call_operand.vmem [shape: f32[1,64], index: 2, kind: input, shape index: {}]   ;;  %s945_s4 = inlined_call_operand.vmem [shape: f32[1,128], index: 4, kind: input, shape index: {}]   ;;  %s946_s5 = inlined_call_operand.vmem [shape: f32[128,128], index: 5, kind: output, shape index: {}]  }
   0x1   :  { %v741_v0 = vld [vmem:[%s941_s1] sm:$0xff]   ;;  %v742_v1 = vld [vmem:[%s941_s1 + $0x8] sm:$0xff]   ;;  %v743_v2 = vld [vmem:[%s941_s1 + $0x10] sm:$0xff]  }
   0x2   :  { %637 = vmatprep.subr.bf16.mxu0 %v741_v0  ;;  %v744_v3 = vld [vmem:[%s941_s1 + $0x18] sm:$0xff]   ;;  %v749_v4 = vld [vmem:[%s942_s0] sm:$0xff]   ;;  %v746_v6 = vld [vmem:[%s941_s1 + $0x28] sm:$0xff]  }
   0x3   :  { %638 = vmatpush3.bf16.msra.mxu0 %v741_v0  ;;  %653 = vmatprep.mubr.bf16.mxu0 %v749_v4  ;;  %v745_v5 = vld [vmem:[%s941_s1 + $0x20] sm:$0xff]   ;;  %v758_v8 = vld [vmem:[%s943_s3 + $0x8] sm:$0xff]   ;;  %v747_v9 = vld [vmem:[%s941_s1 + $0x30] sm:$0xff]  }
   0x4   :  { %639 = vmatprep.subr.bf16.mxu0 %v742_v1  ;;  %v757_v7 = vld [vmem:[%s943_s3] sm:$0xff]   ;;  %v748_v10 = vld [vmem:[%s941_s1 + $0x38] sm:$0xff]   ;;  %v827_v11 = vld [vmem:[%s942_s0 + $0x8] sm:$0xff]  }
   0x5   :  { %669 = vmatprep.subr.bf16.mxu1 %v757_v7  ;;  %v832_v12 = vld [vmem:[%s942_s0 + $0x10] sm:$0xff]   ;;  %v839_v13 = vld [vmem:[%s942_s0 + $0x18] sm:$0xff]   ;;  %v844_v14 = vld [vmem:[%s942_s0 + $0x20] sm:$0xff]  }
   0x6   :  { %670 = vmatpush3.bf16.msra.mxu1 %v757_v7  ;;  %v851_v15 = vld [vmem:[%s942_s0 + $0x28] sm:$0xff]   ;;  %v856_v16 = vld [vmem:[%s942_s0 + $0x30] sm:$0xff]   ;;  %v863_v17 = vld [vmem:[%s942_s0 + $0x38] sm:$0xff]  }
   0x7   :  { %640 = vmatpush3.bf16.msra.mxu0 %v742_v1  ;;  %671 = vmatprep.subr.bf16.mxu1 %v758_v8  ;;  %v759_v18 = vld [vmem:[%s943_s3 + $0x10] sm:$0xff]   ;;  %v760_v19 = vld [vmem:[%s943_s3 + $0x18] sm:$0xff]   ;;  %v563_v20 = vld [vmem:[%s944_s2] ss:$0 sm:$0xff] }
   0x8   :  { %641 = vmatprep.subr.bf16.mxu0 %v743_v2 }
   0xa   :  { %672 = vmatpush3.bf16.msra.mxu1 %v758_v8 }
   0xb   :  { %642 = vmatpush3.bf16.msra.mxu0 %v743_v2  ;;  %673 = vmatprep.subr.bf16.mxu1 %v759_v18 }
   0xc   :  { %643 = vmatprep.subr.bf16.mxu0 %v744_v3 }
   0xe   :  { %674 = vmatpush3.bf16.msra.mxu1 %v759_v18 }
   0xf   :  { %644 = vmatpush3.bf16.msra.mxu0 %v744_v3  ;;  %675 = vmatprep.subr.bf16.mxu1 %v760_v19 }
  0x10   :  { %645 = vmatprep.subr.bf16.mxu0 %v745_v5 }
  0x12   :  { %676 = vmatpush3.bf16.msra.mxu1 %v760_v19 }
  0x13   :  { %646 = vmatpush3.bf16.msra.mxu0 %v745_v5 }
  0x14   :  { %647 = vmatprep.subr.bf16.mxu0 %v746_v6 }
  0x17   :  { %648 = vmatpush3.bf16.msra.mxu0 %v746_v6 }
  0x18   :  { %649 = vmatprep.subr.bf16.mxu0 %v747_v9 }
  0x1b   :  { %650 = vmatpush3.bf16.msra.mxu0 %v747_v9 }
  0x1c   :  { %651 = vmatprep.subr.bf16.mxu0 %v748_v10 }
  0x1f   :  { %652 = vmatpush3.bf16.msra.mxu0 %v748_v10 }
  0x22   :  { %654 = vmatmul.mubr.bf16.vlgmr.msra.gmra.mrb[0].mxu0 %v827_v11 }
  0x23   :  { %657 = vmatprep.mubr.bf16.mxu0 %v832_v12 }
  0x2a   :  { %658 = vmatmul.mubr.bf16.gmra.mrb[4].mxu0 %v839_v13 }
  0x2b   :  { %661 = vmatprep.mubr.bf16.mxu0 %v844_v14 }
  0x32   :  { %662 = vmatmul.mubr.bf16.gmra.mrb[8].mxu0 %v851_v15 }
  0x33   :  { %665 = vmatprep.mubr.bf16.mxu0 %v856_v16 }
  0x3a   :  { %666 = vmatmul.mubr.bf16.gmra.mrb[12].mxu0 %v863_v17 }
  0x3b   :  { %709 = vmatprep.mubr.bf16.mxu0 %v749_v4 }
  0xf5   :  { %v655_v21 = vpop.f32.mrb[0].mxu0 }
  0xf6   :  { %v199_v22 = vadd.f32 %v655_v21, %v563_v20  ;;  %v190_v23 = vpop.f32.mrb[1].mxu0 }
  0xf7   :  { %v191_v24 = vadd.f32 %v563_v20, %v190_v23  ;;  %v656_v25 = vpop.f32.mrb[2].mxu0 }
  0xf8   :  { %v202_v26 = vadd.f32 %v656_v25, %v563_v20  ;;  %v193_v27 = vpop.f32.mrb[3].mxu0  ;;  %v255_v29 = vmax.f32 %v199_v22, 0.0 }
  0xf9   :  { %v194_v28 = vadd.f32 %v563_v20, %v193_v27  ;;  %v253_v31 = vmax.f32 %v191_v24, 0.0 }
  0xfa   :  { %v256_v30 = vmax.f32 %v202_v26, 0.0 }
  0xfb   :  { %v254_v32 = vmax.f32 %v194_v28, 0.0 }
  0xfc   :  { %v270_v33 = vpack.c.bf16 %v256_v30, %v255_v29 }
  0xfd   :  { %v659_v34 = vpop.f32.mrb[4].mxu0  ;;  %v269_v35 = vpack.c.bf16 %v254_v32, %v253_v31 }
  0xfe   :  { %v215_v36 = vadd.f32 %v659_v34, %v563_v20  ;;  %v206_v37 = vpop.f32.mrb[5].mxu0 }
  0xff   :  { %v207_v38 = vadd.f32 %v563_v20, %v206_v37  ;;  %v660_v39 = vpop.f32.mrb[6].mxu0  ;;  %677 = vmatprep.mubr.msk.bf16.mxu1 %vm309_vm0, %v269_v35 }
 0x100   :  { %v218_v40 = vadd.f32 %v660_v39, %v563_v20  ;;  %v209_v41 = vpop.f32.mrb[7].mxu0  ;;  %678 = vmatmul.mubr.msk.bf16.vlgmr.msra.gmra.mrb[0].mxu1 %vm309_vm0, %v270_v33  ;;  %v259_v43 = vmax.f32 %v215_v36, 0.0 }
 0x101   :  { %v210_v42 = vadd.f32 %v563_v20, %v209_v41  ;;  %v257_v45 = vmax.f32 %v207_v38, 0.0 }
 0x102   :  { %v260_v44 = vmax.f32 %v218_v40, 0.0 }
 0x103   :  { %v258_v46 = vmax.f32 %v210_v42, 0.0 }
 0x104   :  { %v272_v47 = vpack.c.bf16 %v260_v44, %v259_v43  ;;  %v592_v43 = vld [vmem:[%s945_s4] ss:$0 sm:$0xff] }
 0x105   :  { %v271_v48 = vpack.c.bf16 %v258_v46, %v257_v45  ;;  %v663_v49 = vpop.f32.mrb[8].mxu0 }
 0x106   :  { %v231_v50 = vadd.f32 %v663_v49, %v563_v20  ;;  %v222_v51 = vpop.f32.mrb[9].mxu0 }
 0x107   :  { %v223_v52 = vadd.f32 %v563_v20, %v222_v51  ;;  %v664_v53 = vpop.f32.mrb[10].mxu0  ;;  %681 = vmatprep.mubr.msk.bf16.mxu1 %vm309_vm0, %v271_v48 }
 0x108   :  { %v234_v54 = vadd.f32 %v664_v53, %v563_v20  ;;  %v225_v55 = vpop.f32.mrb[11].mxu0  ;;  %682 = vmatmul.mubr.msk.bf16.gmra.mrb[4].mxu1 %vm309_vm0, %v272_v47  ;;  %v263_v57 = vmax.f32 %v231_v50, 0.0 }
 0x109   :  { %v226_v56 = vadd.f32 %v563_v20, %v225_v55  ;;  %v261_v59 = vmax.f32 %v223_v52, 0.0 }
 0x10a   :  { %v264_v58 = vmax.f32 %v234_v54, 0.0 }
 0x10b   :  { %v262_v60 = vmax.f32 %v226_v56, 0.0 }
 0x10c   :  { %v274_v61 = vpack.c.bf16 %v264_v58, %v263_v57 }
 0x10d   :  { %v273_v62 = vpack.c.bf16 %v262_v60, %v261_v59  ;;  %v667_v63 = vpop.f32.mrb[12].mxu0 }
 0x10e   :  { %v247_v0 = vadd.f32 %v667_v63, %v563_v20  ;;  %v238_v1 = vpop.f32.mrb[13].mxu0 }
 0x10f   :  { %v239_v2 = vadd.f32 %v563_v20, %v238_v1  ;;  %v668_v3 = vpop.f32.mrb[14].mxu0  ;;  %685 = vmatprep.mubr.msk.bf16.mxu1 %vm309_vm0, %v273_v62 }
 0x110   :  { %v250_v4 = vadd.f32 %v668_v3, %v563_v20  ;;  %v241_v5 = vpop.f32.mrb[15].mxu0  ;;  %686 = vmatmul.mubr.msk.bf16.gmra.mrb[8].mxu1 %vm309_vm0, %v274_v61  ;;  %v267_v7 = vmax.f32 %v247_v0, 0.0 }
 0x111   :  { %v242_v6 = vadd.f32 %v563_v20, %v241_v5  ;;  %v265_v9 = vmax.f32 %v239_v2, 0.0 }
 0x112   :  { %v268_v8 = vmax.f32 %v250_v4, 0.0 }
 0x113   :  { %v266_v10 = vmax.f32 %v242_v6, 0.0 }
 0x114   :  { %v276_v18 = vpack.c.bf16 %v268_v8, %v267_v7 }
 0x115   :  { %v275_v19 = vpack.c.bf16 %v266_v10, %v265_v9 }
 0x117   :  { %689 = vmatprep.mubr.msk.bf16.mxu1 %vm309_vm0, %v275_v19 }
 0x118   :  { %690 = vmatmul.mubr.msk.bf16.gmra.mrb[12].mxu1 %vm309_vm0, %v276_v18 }
 0x119   :  { %713 = vmatprep.mubr.bf16.mxu1 %v832_v12 }
 0x1d3   :  { %v679_v21 = vpop.f32.mrb[0].mxu1 }
 0x1d4   :  { %v368_v22 = vpop.f32.mrb[1].mxu1 }
 0x1d5   :  { %v680_v23 = vpop.f32.mrb[2].mxu1 }
 0x1d6   :  { %v432_v24 = vpack.c.bf16 %v680_v23, %v679_v21  ;;  %v371_v25 = vpop.f32.mrb[3].mxu1 }
 0x1d7   :  { %v431_v26 = vpack.c.bf16 %v371_v25, %v368_v22 }
 0x1d9   :  { %693 = vmatprep.subr.bf16.mxu0 %v431_v26  ;;  %725 = vmatprep.subr.bf16.mxu1 %v431_v26 }
 0x1da   :  { %694 = vmatpush3.bf16.msra.mxu0 %v431_v26  ;;  %733 = vmatpush3.bf16.msra.mxu1 %v431_v26 }
 0x1db   :  { %v683_v20 = vpop.f32.mrb[4].mxu1  ;;  %695 = vmatprep.subr.bf16.mxu0 %v432_v24  ;;  %726 = vmatprep.subr.bf16.mxu1 %v432_v24 }
 0x1dc   :  { %v384_v27 = vpop.f32.mrb[5].mxu1 }
 0x1dd   :  { %v684_v28 = vpop.f32.mrb[6].mxu1 }
 0x1de   :  { %v434_v29 = vpack.c.bf16 %v684_v28, %v683_v20  ;;  %v387_v30 = vpop.f32.mrb[7].mxu1  ;;  %696 = vmatpush3.bf16.msra.mxu0 %v432_v24  ;;  %734 = vmatpush3.bf16.msra.mxu1 %v432_v24 }
 0x1df   :  { %v433_v12 = vpack.c.bf16 %v387_v30, %v384_v27 }
 0x1e1   :  { %697 = vmatprep.subr.bf16.mxu0 %v433_v12  ;;  %727 = vmatprep.subr.bf16.mxu1 %v433_v12 }
 0x1e2   :  { %698 = vmatpush3.bf16.msra.mxu0 %v433_v12  ;;  %735 = vmatpush3.bf16.msra.mxu1 %v433_v12 }
 0x1e3   :  { %v687_v31 = vpop.f32.mrb[8].mxu1  ;;  %699 = vmatprep.subr.bf16.mxu0 %v434_v29  ;;  %728 = vmatprep.subr.bf16.mxu1 %v434_v29 }
 0x1e4   :  { %v400_v32 = vpop.f32.mrb[9].mxu1 }
 0x1e5   :  { %v688_v33 = vpop.f32.mrb[10].mxu1 }
 0x1e6   :  { %v436_v34 = vpack.c.bf16 %v688_v33, %v687_v31  ;;  %v403_v35 = vpop.f32.mrb[11].mxu1  ;;  %700 = vmatpush3.bf16.msra.mxu0 %v434_v29  ;;  %736 = vmatpush3.bf16.msra.mxu1 %v434_v29 }
 0x1e7   :  { %v435_v36 = vpack.c.bf16 %v403_v35, %v400_v32 }
 0x1e9   :  { %701 = vmatprep.subr.bf16.mxu0 %v435_v36  ;;  %729 = vmatprep.subr.bf16.mxu1 %v435_v36 }
 0x1ea   :  { %702 = vmatpush3.bf16.msra.mxu0 %v435_v36  ;;  %737 = vmatpush3.bf16.msra.mxu1 %v435_v36 }
 0x1eb   :  { %v691_v37 = vpop.f32.mrb[12].mxu1  ;;  %703 = vmatprep.subr.bf16.mxu0 %v436_v34  ;;  %730 = vmatprep.subr.bf16.mxu1 %v436_v34 }
 0x1ec   :  { %v416_v38 = vpop.f32.mrb[13].mxu1 }
 0x1ed   :  { %v692_v39 = vpop.f32.mrb[14].mxu1 }
 0x1ee   :  { %v438_v40 = vpack.c.bf16 %v692_v39, %v691_v37  ;;  %v419_v41 = vpop.f32.mrb[15].mxu1  ;;  %704 = vmatpush3.bf16.msra.mxu0 %v436_v34  ;;  %738 = vmatpush3.bf16.msra.mxu1 %v436_v34 }
 0x1ef   :  { %v437_v42 = vpack.c.bf16 %v419_v41, %v416_v38 }
 0x1f1   :  { %705 = vmatprep.subr.bf16.mxu0 %v437_v42  ;;  %731 = vmatprep.subr.bf16.mxu1 %v437_v42 }
 0x1f2   :  { %706 = vmatpush3.bf16.msra.mxu0 %v437_v42  ;;  %739 = vmatpush3.bf16.msra.mxu1 %v437_v42 }
 0x1f3   :  { %707 = vmatprep.subr.bf16.mxu0 %v438_v40  ;;  %732 = vmatprep.subr.bf16.mxu1 %v438_v40 }
 0x1f6   :  { %708 = vmatpush3.bf16.msra.mxu0 %v438_v40  ;;  %740 = vmatpush3.bf16.msra.mxu1 %v438_v40 }
 0x1f9   :  { %714 = vmatmul.mubr.bf16.vlgmr.msra.gmra.mrb[16].mxu1 %v839_v13  ;;  %710 = vmatmul.mubr.bf16.vlgmr.msra.gmra.mrb[16].mxu0 %v827_v11 }
 0x1fa   :  { %717 = vmatprep.mubr.bf16.mxu1 %v844_v14 }
 0x201   :  { %718 = vmatmul.mubr.bf16.gmra.mrb[20].mxu1 %v851_v15 }
 0x202   :  { %721 = vmatprep.mubr.bf16.mxu1 %v856_v16 }
 0x209   :  { %722 = vmatmul.mubr.bf16.gmra.mrb[24].mxu1 %v863_v17 }
 0x2cc   :  { %v715_v44 = vpop.f32.mrb[16].mxu1  ;;  %v711_v45 = vpop.f32.mrb[16].mxu0 }
 0x2cd   :  { %v505_v46 = vadd.f32 %v715_v44, %v592_v43  ;;  %v496_v47 = vpop.f32.mrb[17].mxu1  ;;  %v489_v48 = vadd.f32 %v711_v45, %v592_v43  ;;  %v480_v13 = vpop.f32.mrb[17].mxu0 }
 0x2ce   :  { %v497_v49 = vadd.f32 %v592_v43, %v496_v47  ;;  %v716_v11 = vpop.f32.mrb[18].mxu1  ;;  %v481_v50 = vadd.f32 %v592_v43, %v480_v13  ;;  %v712_v14 = vpop.f32.mrb[18].mxu0 }
 0x2cf   :  { %549 = vst [vmem:[%s946_s5 + $0x30] sm:$0xff] %v505_v46  ;;  %v508_v15 = vadd.f32 %v716_v11, %v592_v43  ;;  %v499_v16 = vpop.f32.mrb[19].mxu1  ;;  %545 = vst [vmem:[%s946_s5 + $0x10] sm:$0xff] %v489_v48  ;;  %v492_v17 = vadd.f32 %v712_v14, %v592_v43  ;;  %v483_v51 = vpop.f32.mrb[19].mxu0 }
 0x2d0   :  { %547 = vst [vmem:[%s946_s5 + $0x20] sm:$0xff] %v497_v49  ;;  %v500_v52 = vadd.f32 %v592_v43, %v499_v16  ;;  %543 = vst [vmem:[%s946_s5] sm:$0xff] %v481_v50  ;;  %v484_v53 = vadd.f32 %v592_v43, %v483_v51 }
 0x2d1   :  { %550 = vst [vmem:[%s946_s5 + $0x38] sm:$0xff] %v508_v15  ;;  %546 = vst [vmem:[%s946_s5 + $0x18] sm:$0xff] %v492_v17 }
 0x2d2   :  { %548 = vst [vmem:[%s946_s5 + $0x28] sm:$0xff] %v500_v52  ;;  %544 = vst [vmem:[%s946_s5 + $0x8] sm:$0xff] %v484_v53 }
 0x2d4   :  { %v719_v54 = vpop.f32.mrb[20].mxu1 }
 0x2d5   :  { %v521_v55 = vadd.f32 %v719_v54, %v592_v43  ;;  %v512_v56 = vpop.f32.mrb[21].mxu1 }
 0x2d6   :  { %v513_v57 = vadd.f32 %v592_v43, %v512_v56  ;;  %v720_v58 = vpop.f32.mrb[22].mxu1 }
 0x2d7   :  { %553 = vst [vmem:[%s946_s5 + $0x50] sm:$0xff] %v521_v55  ;;  %v524_v59 = vadd.f32 %v720_v58, %v592_v43  ;;  %v515_v60 = vpop.f32.mrb[23].mxu1 }
 0x2d8   :  { %551 = vst [vmem:[%s946_s5 + $0x40] sm:$0xff] %v513_v57  ;;  %v516_v61 = vadd.f32 %v592_v43, %v515_v60 }
 0x2d9   :  { %554 = vst [vmem:[%s946_s5 + $0x58] sm:$0xff] %v524_v59 }
 0x2da   :  { %552 = vst [vmem:[%s946_s5 + $0x48] sm:$0xff] %v516_v61 }
 0x2dc   :  { %v723_v62 = vpop.f32.mrb[24].mxu1 }
 0x2dd   :  { %v537_v63 = vadd.f32 %v723_v62, %v592_v43  ;;  %v528_v0 = vpop.f32.mrb[25].mxu1 }
 0x2de   :  { %v529_v1 = vadd.f32 %v592_v43, %v528_v0  ;;  %v724_v2 = vpop.f32.mrb[26].mxu1 }
 0x2df   :  { %557 = vst [vmem:[%s946_s5 + $0x70] sm:$0xff] %v537_v63  ;;  %v540_v3 = vadd.f32 %v724_v2, %v592_v43  ;;  %v531_v4 = vpop.f32.mrb[27].mxu1 }
 0x2e0   :  { %555 = vst [vmem:[%s946_s5 + $0x60] sm:$0xff] %v529_v1  ;;  %v532_v5 = vadd.f32 %v592_v43, %v531_v4 }
 0x2e1   :  { %558 = vst [vmem:[%s946_s5 + $0x78] sm:$0xff] %v540_v3 }
 0x2e2   :  { %556 = vst [vmem:[%s946_s5 + $0x68] sm:$0xff] %v532_v5 }

</bundles_post_ra>
